<compile_context>
chip_gen: v7x
topology: tpu7x:2x2x1
jax: 0.10.0
libtpu: 0.0.40
codegen_flags: <defaults>
</compile_context>

<pallas_src>
import functools
import math

import jax
import jax.numpy as jnp
import numpy as np
from jax.experimental import pallas as pl
from jax.experimental.pallas import tpu as pltpu


# ----------------------------------------------------------------------------- tiling helper
def _tile(dim, target, align):
    """Largest multiple of `align` that divides `dim` and is <= target; else the full dim."""
    if dim <= target:
        return dim
    t = (target // align) * align
    while t >= align:
        if dim % t == 0:
            return t
        t -= align
    return dim


# ----------------------------------------------------------------------------- tiled linear
def _linear_kernel(x_ref, w_ref, b_ref, o_ref, acc_ref, *, relu):
    # x: (tm, tk), w: (tk, tn)  (pre-transposed [K, N] layout), b: (1, tn)
    @pl.when(pl.program_id(2) == 0)
    def _init():
        acc_ref[...] = jnp.zeros_like(acc_ref)

    acc_ref[...] += jax.lax.dot_general(
        x_ref[...], w_ref[...],
        dimension_numbers=(((1,), (0,)), ((), ())),
        preferred_element_type=jnp.float32)

    @pl.when(pl.program_id(2) == pl.num_programs(2) - 1)
    def _finalize():
        y = acc_ref[...] + b_ref[...].astype(jnp.float32)
        if relu:
            y = jnp.maximum(y, 0.0)
        o_ref[...] = y.astype(o_ref.dtype)


def linear(x, w, b, relu=False):
    """y = x @ w + b   (x: [M,K], w: [K,N] pre-transposed, b: [N])."""
    M, K = x.shape
    K2, N = w.shape
    assert K == K2
    tm = _tile(M, 512, 8)
    tn = _tile(N, 512, 128)
    tk = _tile(K, 512, 128)
    grid = (M // tm, N // tn, K // tk)
    return pl.pallas_call(
        functools.partial(_linear_kernel, relu=relu),
        out_shape=jax.ShapeDtypeStruct((M, N), x.dtype),
        grid=grid,
        in_specs=[
            pl.BlockSpec((tm, tk), lambda i, j, k: (i, k)),
            pl.BlockSpec((tk, tn), lambda i, j, k: (k, j)),
            pl.BlockSpec((1, tn), lambda i, j, k: (0, j)),
        ],
        out_specs=pl.BlockSpec((tm, tn), lambda i, j, k: (i, j)),
        scratch_shapes=[pltpu.VMEM((tm, tn), jnp.float32)],
        compiler_params=pltpu.CompilerParams(
            dimension_semantics=("parallel", "parallel", "arbitrary")),
    )(x, w, b.reshape(1, N))


# ----------------------------------------------------------------------------- fused add + LayerNorm
def _add_ln_kernel(x_ref, r_ref, g_ref, b_ref, o_ref):
    x = x_ref[...].astype(jnp.float32) + r_ref[...].astype(jnp.float32)
    mean = jnp.mean(x, axis=-1, keepdims=True)
    xc = x - mean
    var = jnp.mean(xc * xc, axis=-1, keepdims=True)
    xn = xc * jax.lax.rsqrt(var + 1e-5)
    o_ref[...] = (xn * g_ref[...] + b_ref[...]).astype(o_ref.dtype)


def add_layernorm(x, r, gamma, beta):
    """LayerNorm(x + r) over the last dim.  x, r: [M, D]."""
    M, D = x.shape
    tm = _tile(M, 1024, 8)
    return pl.pallas_call(
        _add_ln_kernel,
        out_shape=jax.ShapeDtypeStruct((M, D), x.dtype),
        grid=(M // tm,),
        in_specs=[
            pl.BlockSpec((tm, D), lambda i: (i, 0)),
            pl.BlockSpec((tm, D), lambda i: (i, 0)),
            pl.BlockSpec((1, D), lambda i: (0, 0)),
            pl.BlockSpec((1, D), lambda i: (0, 0)),
        ],
        out_specs=pl.BlockSpec((tm, D), lambda i: (i, 0)),
        compiler_params=pltpu.CompilerParams(dimension_semantics=("parallel",)),
    )(x, r, gamma.reshape(1, D), beta.reshape(1, D))


# ----------------------------------------------------------------------------- attention
def _mha_kernel(q_ref, kv_ref, o_ref, *, n_heads, dh, scale, causal):
    # Per batch element.  q: (1, Sq, D) merged-head, kv: (1, Sk, 2*D) = [K | V] merged-head.
    Sq = q_ref.shape[1]
    Sk = kv_ref.shape[1]
    D = n_heads * dh
    for h in range(n_heads):                      # small static unroll (H = D // 64)
        qh = q_ref[0, :, h * dh:(h + 1) * dh]               # (Sq, Dh)
        kh = kv_ref[0, :, h * dh:(h + 1) * dh]              # (Sk, Dh)
        vh = kv_ref[0, :, D + h * dh:D + (h + 1) * dh]      # (Sk, Dh)
        s = jax.lax.dot_general(
            qh, kh, dimension_numbers=(((1,), (1,)), ((), ())),
            preferred_element_type=jnp.float32) * scale      # (Sq, Sk)
        if causal:
            row = jax.lax.broadcasted_iota(jnp.int32, (Sq, Sk), 0)
            col = jax.lax.broadcasted_iota(jnp.int32, (Sq, Sk), 1)
            s = jnp.where(col > row, jnp.float32(-1e9), s)
        m = jnp.max(s, axis=-1, keepdims=True)
        p = jnp.exp(s - m)
        denom = jnp.sum(p, axis=-1, keepdims=True)
        p = p * pl.reciprocal(denom, approx=True)
        oh = jax.lax.dot_general(
            p, vh, dimension_numbers=(((1,), (0,)), ((), ())),
            preferred_element_type=jnp.float32)              # (Sq, Dh)
        o_ref[0, :, h * dh:(h + 1) * dh] = oh.astype(o_ref.dtype)


def mha(q, kv, n_heads, causal):
    """q: [B, Sq, D] merged heads, kv: [B, Sk, 2*D] = concat(K, V) -> [B, Sq, D]."""
    B, Sq, D = q.shape
    Sk = kv.shape[1]
    dh = D // n_heads
    return pl.pallas_call(
        functools.partial(_mha_kernel, n_heads=n_heads, dh=dh,
                          scale=1.0 / math.sqrt(dh), causal=causal),
        out_shape=jax.ShapeDtypeStruct((B, Sq, D), q.dtype),
        grid=(B,),
        in_specs=[
            pl.BlockSpec((1, Sq, D), lambda b: (b, 0, 0)),
            pl.BlockSpec((1, Sk, 2 * D), lambda b: (b, 0, 0)),
        ],
        out_specs=pl.BlockSpec((1, Sq, D), lambda b: (b, 0, 0)),
        compiler_params=pltpu.CompilerParams(dimension_semantics=("parallel",)),
    )(q, kv)


# ----------------------------------------------------------------------------- decoder layer
def decoder_layer(x, mem, lp, n_heads):
    B, S, D = x.shape
    Sk = mem.shape[1]
    x2d = x.reshape(B * S, D)

    # masked self-attention (fused QKV projection -> one matmul)
    qkv = linear(x2d, lp["self_in_w"], lp["self_in_b"]).reshape(B, S, 3 * D)
    a = mha(qkv[..., :D], qkv[..., D:], n_heads, causal=True)
    a = linear(a.reshape(B * S, D), lp["self_out_w"], lp["self_out_b"])
    x2d = add_layernorm(x2d, a, lp["norm1_g"], lp["norm1_b"])

    # cross-attention over encoder memory (fused KV projection)
    q = linear(x2d, lp["cross_q_w"], lp["cross_q_b"]).reshape(B, S, D)
    kv = linear(mem.reshape(B * Sk, D), lp["cross_kv_w"], lp["cross_kv_b"]).reshape(B, Sk, 2 * D)
    a = mha(q, kv, n_heads, causal=False)
    a = linear(a.reshape(B * S, D), lp["cross_out_w"], lp["cross_out_b"])
    x2d = add_layernorm(x2d, a, lp["norm2_g"], lp["norm2_b"])

    # feed-forward (ReLU fused into first matmul epilogue)
    h = linear(x2d, lp["ff1_w"], lp["ff1_b"], relu=True)
    h = linear(h, lp["ff2_w"], lp["ff2_b"])
    x2d = add_layernorm(x2d, h, lp["norm3_g"], lp["norm3_b"])
    return x2d.reshape(B, S, D)


# ----------------------------------------------------------------------------- forward (teacher forcing)
def forward_teacher_forcing(params, encoder_out, encoded_captions, caption_lengths, n_heads):
    B = encoder_out.shape[0]
    enc_dim = encoder_out.shape[-1]
    D = params["init_c_w"].shape[1]
    V = params["fc_w"].shape[1]

    enc = encoder_out.reshape(B, -1, enc_dim)
    num_pixels = enc.shape[1]
    mem = linear(enc.reshape(B * num_pixels, enc_dim),
                 params["init_c_w"], params["init_c_b"]).reshape(B, num_pixels, D)

    # Caption-length bookkeeping on host (mirrors PyTorch: lengths are sorted descending but the
    # batch itself is NOT reordered before decoding; decode_lengths is a Python list via .tolist()).
    cap_len = np.asarray(caption_lengths)[:, 0]
    order = np.argsort(-cap_len)
    sorted_len = cap_len[order]
    decode_lengths = (sorted_len - 1).tolist()
    sort_ind = jnp.asarray(order, dtype=jnp.int32)

    decoder_input = encoded_captions[:, :-1]                 # [B, L]
    L = decoder_input.shape[1]
    emb = params["embedding"][decoder_input]                 # embedding gather (XLA)
    emb = emb + params["pe"][:L][None]                       # positional encoding (dropout = identity)

    x = emb
    for lp in params["layers"]:
        x = decoder_layer(x, mem, lp, n_heads)

    predictions = linear(x.reshape(B * L, D), params["fc_w"], params["fc_b"]).reshape(B, L, V)

    alphas = jnp.zeros((B, int(max(decode_lengths)), num_pixels), jnp.float32)
    return predictions, encoded_captions, decode_lengths, alphas, sort_ind


# ----------------------------------------------------------------------------- params
def make_positional_encoding(max_len, d_model):
    pe = np.zeros((max_len, d_model), np.float32)
    position = np.arange(0, max_len, dtype=np.float32)[:, None]
    div_term = np.exp(np.arange(0, d_model, 2, dtype=np.float32) * (-math.log(10000.0) / d_model))
    pe[:, 0::2] = np.sin(position * div_term)
    pe[:, 1::2] = np.cos(position * div_term)
    return jnp.asarray(pe)


def init_params(key, *, embed_dim, vocab_size, encoder_dim, n_layers, ff_dim, max_len):
    D = embed_dim
    keys = iter(jax.random.split(key, 4 + 8 * n_layers))

    def lin(k, in_f, out_f):
        # weights stored pre-transposed as [in_features, out_features] for MXU-friendly x @ w
        bound = 1.0 / math.sqrt(in_f)
        kw, kb = jax.random.split(k)
        w = jax.random.uniform(kw, (in_f, out_f), jnp.float32, -bound, bound)
        b = jax.random.uniform(kb, (out_f,), jnp.float32, -bound, bound)
        return w, b

    params = {}
    params["embedding"] = jax.random.uniform(next(keys), (vocab_size, D), jnp.float32, -0.1, 0.1)
    params["pe"] = make_positional_encoding(max_len, D)
    params["init_c_w"], params["init_c_b"] = lin(next(keys), encoder_dim, D)
    params["fc_w"], params["fc_b"] = lin(next(keys), D, vocab_size)

    layers = []
    for _ in range(n_layers):
        lp = {}
        lp["self_in_w"], lp["self_in_b"] = lin(next(keys), D, 3 * D)      # fused QKV
        lp["self_out_w"], lp["self_out_b"] = lin(next(keys), D, D)
        lp["cross_q_w"], lp["cross_q_b"] = lin(next(keys), D, D)
        lp["cross_kv_w"], lp["cross_kv_b"] = lin(next(keys), D, 2 * D)    # fused KV
        lp["cross_out_w"], lp["cross_out_b"] = lin(next(keys), D, D)
        lp["ff1_w"], lp["ff1_b"] = lin(next(keys), D, ff_dim)
        lp["ff2_w"], lp["ff2_b"] = lin(next(keys), ff_dim, D)
        for n in ("norm1", "norm2", "norm3"):
            lp[n + "_g"] = jnp.ones((D,), jnp.float32)
            lp[n + "_b"] = jnp.zeros((D,), jnp.float32)
        layers.append(lp)
    params["layers"] = layers
    return params


# ----------------------------------------------------------------------------- main
if __name__ == "__main__":
    B = 2
    embed_dim = decoder_dim = 128            # n_heads = decoder_dim // 64 = 2
    n_heads = decoder_dim // 64
    encoder_dim = 256
    vocab_size = 80
    n_layers = 1
    max_len = 101
    ff_dim = 4 * decoder_dim
    Hs = Ws = 4                              # encoder spatial grid -> num_pixels = 16
    cap_seq = 9                              # decoder input length = 8

    key = jax.random.PRNGKey(0)
    k_param, k_enc, k_cap = jax.random.split(key, 3)
    params = init_params(k_param, embed_dim=embed_dim, vocab_size=vocab_size,
                         encoder_dim=encoder_dim, n_layers=n_layers,
                         ff_dim=ff_dim, max_len=max_len)

    encoder_out = jax.random.normal(k_enc, (B, Hs, Ws, encoder_dim), jnp.float32)
    encoded_captions = jax.random.randint(k_cap, (B, cap_seq), 0, vocab_size, jnp.int32)
    caption_lengths = jnp.array([[9], [7]], jnp.int32)

    preds, caps, dec_lens, alphas, sort_ind = forward_teacher_forcing(
        params, encoder_out, encoded_captions, caption_lengths, n_heads)

    jax.block_until_ready(preds)
    jax.block_until_ready(alphas)

    assert preds.shape == (B, cap_seq - 1, vocab_size)
    assert alphas.shape == (B, int(max(dec_lens)), Hs * Ws)
    assert bool(jnp.all(jnp.isfinite(preds)))
    print("KERNEL_OK")
</pallas_src>

<mosaic_0001>
module attributes {stable_mosaic.version = 11 : i64} {
  func.func @_linear_kernel(%arg0: i32, %arg1: i32, %arg2: i32, %arg3: memref<32x256xf32, #tpu.memory_space<vmem>>, %arg4: memref<256x128xf32, #tpu.memory_space<vmem>>, %arg5: memref<1x128xf32, #tpu.memory_space<vmem>>, %arg6: memref<32x128xf32, #tpu.memory_space<vmem>>, %arg7: memref<32x128xf32, #tpu.memory_space<vmem>>) attributes {dimension_semantics = [#tpu.dimension_semantics<parallel>, #tpu.dimension_semantics<parallel>, #tpu.dimension_semantics<arbitrary>], iteration_bounds = array<i64: 1, 1, 1>, scalar_prefetch = 0 : i64, scratch_operands = 1 : i64, tpu.core_type = #tpu.core_type<tc>, window_params = [{transform_indices = @transform_0, window_bounds = array<i64: 32, 256>}, {transform_indices = @transform_1, window_bounds = array<i64: 256, 128>}, {transform_indices = @transform_2, window_bounds = array<i64: 1, 128>}, {transform_indices = @transform_3, window_bounds = array<i64: 32, 128>}]} {
    %c0_i32 = arith.constant 0 : i32
    %0 = arith.cmpi eq, %arg2, %c0_i32 : i32
    %1 = arith.extui %0 : i1 to i32
    %c0_i32_0 = arith.constant 0 : i32
    %2 = arith.cmpi ne, %1, %c0_i32_0 : i32
    scf.if %2 {
      %cst_10 = arith.constant 0.000000e+00 : f32
      %12 = vector.broadcast %cst_10 : f32 to vector<32x128xf32>
      %c0_11 = arith.constant 0 : index
      %c0_12 = arith.constant 0 : index
      %13 = vector.load %arg7[%c0_11, %c0_12] : memref<32x128xf32, #tpu.memory_space<vmem>>, vector<32x128xf32>
      tpu.vector_store %arg7[%c0_11, %c0_12], %12 {strides = array<i32>} : memref<32x128xf32, #tpu.memory_space<vmem>>, vector<32x128xf32>,
    } else {
    }
    %c0 = arith.constant 0 : index
    %c0_1 = arith.constant 0 : index
    %3 = vector.load %arg7[%c0, %c0_1] : memref<32x128xf32, #tpu.memory_space<vmem>>, vector<32x128xf32>
    %c0_2 = arith.constant 0 : index
    %c0_3 = arith.constant 0 : index
    %4 = vector.load %arg3[%c0_2, %c0_3] : memref<32x256xf32, #tpu.memory_space<vmem>>, vector<32x256xf32>
    %c0_4 = arith.constant 0 : index
    %c0_5 = arith.constant 0 : index
    %5 = vector.load %arg4[%c0_4, %c0_5] : memref<256x128xf32, #tpu.memory_space<vmem>>, vector<256x128xf32>
    %cst = arith.constant dense<0.000000e+00> : vector<32x128xf32>
    %6 = tpu.matmul %4, %5, %cst {dimension_numbers = #tpu.dot_dimension_numbers<[1], [0], [0], [1], [0, 0, 1, 1], [], []>} : vector<32x256xf32>, vector<256x128xf32>, vector<32x128xf32> -> vector<32x128xf32>
    %7 = arith.addf %3, %6 : vector<32x128xf32>
    %c0_6 = arith.constant 0 : index
    %c0_7 = arith.constant 0 : index
    %8 = vector.load %arg7[%c0_6, %c0_7] : memref<32x128xf32, #tpu.memory_space<vmem>>, vector<32x128xf32>
    tpu.vector_store %arg7[%c0_6, %c0_7], %7 {strides = array<i32>} : memref<32x128xf32, #tpu.memory_space<vmem>>, vector<32x128xf32>,
    %c0_i32_8 = arith.constant 0 : i32
    %9 = arith.cmpi eq, %arg2, %c0_i32_8 : i32
    %10 = arith.extui %9 : i1 to i32
    %c0_i32_9 = arith.constant 0 : i32
    %11 = arith.cmpi ne, %10, %c0_i32_9 : i32
    scf.if %11 {
      %c0_10 = arith.constant 0 : index
      %c0_11 = arith.constant 0 : index
      %12 = vector.load %arg7[%c0_10, %c0_11] : memref<32x128xf32, #tpu.memory_space<vmem>>, vector<32x128xf32>
      %c0_12 = arith.constant 0 : index
      %c0_13 = arith.constant 0 : index
      %13 = vector.load %arg5[%c0_12, %c0_13] : memref<1x128xf32, #tpu.memory_space<vmem>>, vector<1x128xf32>
      %14 = vector.broadcast %13 : vector<1x128xf32> to vector<32x128xf32>
      %15 = arith.addf %12, %14 : vector<32x128xf32>
      %c0_14 = arith.constant 0 : index
      %c0_15 = arith.constant 0 : index
      %16 = vector.load %arg6[%c0_14, %c0_15] : memref<32x128xf32, #tpu.memory_space<vmem>>, vector<32x128xf32>
      tpu.vector_store %arg6[%c0_14, %c0_15], %15 {strides = array<i32>} : memref<32x128xf32, #tpu.memory_space<vmem>>, vector<32x128xf32>,
    } else {
    }
    return
  }
  func.func @transform_0(%arg0: i32, %arg1: i32, %arg2: i32) -> (i32, i32) {
    %c0_i32 = arith.constant 0 : i32
    return %arg0, %arg2 : i32, i32
  }
  func.func @transform_1(%arg0: i32, %arg1: i32, %arg2: i32) -> (i32, i32) {
    %c0_i32 = arith.constant 0 : i32
    return %arg2, %arg1 : i32, i32
  }
  func.func @transform_2(%arg0: i32, %arg1: i32, %arg2: i32) -> (i32, i32) {
    %c0_i32 = arith.constant 0 : i32
    %c0_i32_0 = arith.constant 0 : i32
    return %c0_i32, %arg1 : i32, i32
  }
  func.func @transform_3(%arg0: i32, %arg1: i32, %arg2: i32) -> (i32, i32) {
    %c0_i32 = arith.constant 0 : i32
    return %arg0, %arg1 : i32, i32
  }
}

</mosaic_0001>

<bundles_post_ra>
// kernel: tpu_custom_call.1
= control target key start
LH: loop header
LB: loop body
LE: loop exit
PB: predicated region body
PF: predicated region fallthrough
CT: control target
= control target key end

     0   :  { %8 = vsyncpa [#allocation4], 0  ;;  %s472_s0 = inlined_call_operand.hbm [shape: f32[32,256], index: 0, kind: input, shape index: {}]   ;;  %s473_s1 = inlined_call_operand.hbm [shape: f32[256,128], index: 1, kind: input, shape index: {}]   ;;  %s474_s2 = inlined_call_operand.vmem [shape: f32[1,128], index: 2, kind: input, shape index: {}]   ;;  %s475_s3 = inlined_call_operand.hbm [shape: f32[32,128], index: 3, kind: output, shape index: {}]  }
   0x1   :  { %9 = vsyncpa [#allocation7], 0 }
   0x2   :  { %10 = vsyncpa [#allocation5], 0  ;;  %s400_s12 = smov [#allocation3]   ;;  %s328_s16 = scalar_lea.hbm %s472_s0, 1024 }
   0x3   :  { %s16_s13 = sshll.u32 %s400_s12, 4  ;;  %p329_p0 = scmp.ne.s32.totalorder %s472_s0, %s328_s16  ;;  %s17_s13 = int_to_ptr.vmem [resolvable:$true] %s16_s13 }
   0x4   :  { %p332_p1 = scmp.lt.u32.totalorder %s328_s16, %s472_s0 }
   0x6   :  { %p334_p2 = pnand %p332_p1, %p329_p0 }
   0x8   :  { %337 = shalt.err (!%p334_p2)
}
   0x9   :  { %s338_s21 = scalar_lea.vmem %s17_s13, 1024  ;;  %p343_p4 = scmp.lt.s32.totalorder %s17_s13, %s17_s13 }
   0xa   :  { %p339_p3 = scmp.ne.s32.totalorder %s17_s13, %s338_s21  ;;  %p344_p5 = scmp.lt.s32.totalorder %s338_s21, %s338_s21 }
   0xc   :  { %p345_p6 = por %p344_p5, %p343_p4 }
   0xe   :  { %p346_p7 = pnand %p345_p6, %p339_p3 }
  0x10   :  { %349 = shalt.err (!%p346_p7)
}
  0x11   :  { %s401_s22 = smov 256   ;;  %s402_s23 = smov 16  }
  0x12   :  { %22 = dma.hbm_to_vmem [thread:$0]  %s472_s0, 1024, %s17_s13, [#allocation4], %s401_s22, %s401_s22, %s402_s23  }
  0x13   :  { %s403_s26 = smov [#allocation6]   ;;  %s350_s30 = scalar_lea.hbm %s473_s1, 4096 }
  0x14   :  { %s28_s27 = sshll.u32 %s403_s26, 4  ;;  %p351_p8 = scmp.ne.s32.totalorder %s473_s1, %s350_s30  ;;  %s29_s27 = int_to_ptr.vmem [resolvable:$true] %s28_s27 }
  0x15   :  { %p354_p9 = scmp.lt.u32.totalorder %s350_s30, %s473_s1 }
  0x17   :  { %p356_p10 = pnand %p354_p9, %p351_p8 }
  0x19   :  { %359 = shalt.err (!%p356_p10)
}
  0x1a   :  { %s360_s8 = scalar_lea.vmem %s29_s27, 4096  ;;  %p365_p12 = scmp.lt.s32.totalorder %s29_s27, %s29_s27 }
  0x1b   :  { %p361_p11 = scmp.ne.s32.totalorder %s29_s27, %s360_s8  ;;  %p366_p13 = scmp.lt.s32.totalorder %s360_s8, %s360_s8 }
  0x1d   :  { %p367_p0 = por %p366_p13, %p365_p12 }
  0x1f   :  { %p368_p1 = pnand %p367_p0, %p361_p11 }
  0x21   :  { %371 = shalt.err (!%p368_p1)
}
  0x22   :  { %s404_s0 = smov 128   ;;  %s405_s9 = smov 8  }
  0x23   :  { %34 = dma.hbm_to_vmem [thread:$0]  %s473_s1, 4096, %s29_s27, [#allocation7], %s404_s0, %s404_s0, %s405_s9  }
  0x24   :  { %394 = dma.done.wait [#allocation4], 1024  }
  0x25   :  { %395 = vsyncadd [#allocation4], 4294966272 }
  0x26   :  { %396 = dma.done.wait [#allocation7], 4096  }
  0x27   :  { %397 = vsyncadd [#allocation7], 4294963200  ;;  %v79_v0 = vld [vmem:[#allocation6 + $0x80] sm:$0xff]  ;;  %v80_v1 = vld [vmem:[#allocation6 + $0x88] sm:$0xff]  ;;  %s406_s13 = smov [#allocation8]  }
  0x28   :  { %v63_v2 = vld [vmem:[#allocation6] sm:$0xff]  ;;  %v273_v3 = vpack.c.bf16 %v80_v1, %v79_v0  ;;  %v64_v4 = vld [vmem:[#allocation6 + $0x8] sm:$0xff]  ;;  %v81_v5 = vld [vmem:[#allocation6 + $0x90] sm:$0xff]  ;;  %s215_s14 = sshll.u32 %s406_s13, 4  ;;  %s216_s14 = int_to_ptr.vmem [resolvable:$true] %s215_s14 }
  0x29   :  { %v82_v6 = vld [vmem:[#allocation6 + $0x98] sm:$0xff]  ;;  %v275_v7 = vpack.c.bf16 %v64_v4, %v63_v2  ;;  %v65_v9 = vld [vmem:[#allocation6 + $0x10] sm:$0xff]  ;;  %v83_v11 = vld [vmem:[#allocation6 + $0xa0] sm:$0xff]  ;;  %p377_p3 = scmp.lt.s32.totalorder %s216_s14, %s216_s14 }
  0x2a   :  { %v277_v8 = vpack.c.bf16 %v82_v6, %v81_v5  ;;  %v66_v10 = vld [vmem:[#allocation6 + $0x18] sm:$0xff]  ;;  %274 = vmatprep.subr.bf16.mxu0 %v273_v3  ;;  %305 = vmatprep.subr.bf16.mxu1 %v273_v3  ;;  %v84_v12 = vld [vmem:[#allocation6 + $0xa8] sm:$0xff]  ;;  %v67_v15 = vld [vmem:[#allocation6 + $0x20] sm:$0xff] }
  0x2b   :  { %276 = vmatpush3.bf16.msra.mxu0 %v275_v7  ;;  %313 = vmatpush3.bf16.msra.mxu1 %v275_v7  ;;  %v279_v13 = vpack.c.bf16 %v66_v10, %v65_v9  ;;  %v281_v14 = vpack.c.bf16 %v84_v12, %v83_v11  ;;  %v68_v16 = vld [vmem:[#allocation6 + $0x28] sm:$0xff]  ;;  %v85_v17 = vld [vmem:[#allocation6 + $0xb0] sm:$0xff]  ;;  %v86_v18 = vld [vmem:[#allocation6 + $0xb8] sm:$0xff] }
  0x2c   :  { %278 = vmatprep.subr.bf16.mxu0 %v277_v8  ;;  %306 = vmatprep.subr.bf16.mxu1 %v277_v8  ;;  %v283_v19 = vpack.c.bf16 %v68_v16, %v67_v15  ;;  %v285_v20 = vpack.c.bf16 %v86_v18, %v85_v17  ;;  %v69_v21 = vld [vmem:[#allocation6 + $0x30] sm:$0xff]  ;;  %v70_v22 = vld [vmem:[#allocation6 + $0x38] sm:$0xff]  ;;  %v87_v23 = vld [vmem:[#allocation6 + $0xc0] sm:$0xff] }
  0x2d   :  { %v88_v24 = vld [vmem:[#allocation6 + $0xc8] sm:$0xff]  ;;  %v287_v27 = vpack.c.bf16 %v70_v22, %v69_v21  ;;  %v71_v29 = vld [vmem:[#allocation6 + $0x40] sm:$0xff]  ;;  %v89_v31 = vld [vmem:[#allocation6 + $0xd0] sm:$0xff] }
  0x2e   :  { %v56_v25 = vld [vmem:[#allocation3 + $0x8] sm:$0xff]  ;;  %v289_v28 = vpack.c.bf16 %v88_v24, %v87_v23  ;;  %v90_v32 = vld [vmem:[#allocation6 + $0xd8] sm:$0xff]  ;;  %v73_v35 = vld [vmem:[#allocation6 + $0x50] sm:$0xff] }
  0x2f   :  { %280 = vmatpush3.bf16.msra.mxu0 %v279_v13  ;;  %314 = vmatpush3.bf16.msra.mxu1 %v279_v13  ;;  %v60_v26 = vld [vmem:[#allocation3 + $0x28] sm:$0xff]  ;;  %v293_v34 = vpack.c.bf16 %v90_v32, %v89_v31  ;;  %v74_v36 = vld [vmem:[#allocation6 + $0x58] sm:$0xff]  ;;  %v91_v37 = vld [vmem:[#allocation6 + $0xe0] sm:$0xff] }
  0x30   :  { %282 = vmatprep.subr.bf16.mxu0 %v281_v14  ;;  %307 = vmatprep.subr.bf16.mxu1 %v281_v14  ;;  %v72_v30 = vld [vmem:[#allocation6 + $0x48] sm:$0xff]  ;;  %v295_v39 = vpack.c.bf16 %v74_v36, %v73_v35  ;;  %v75_v41 = vld [vmem:[#allocation6 + $0x60] sm:$0xff]  ;;  %v93_v43 = vld [vmem:[#allocation6 + $0xf0] sm:$0xff] }
  0x31   :  { %159 = vmatprep.mubr.f32.mxu0 %v56_v25  ;;  %169 = vmatprep.mubr.f32.mxu1 %v60_v26  ;;  %v291_v33 = vpack.c.bf16 %v72_v30, %v71_v29  ;;  %v92_v38 = vld [vmem:[#allocation6 + $0xe8] sm:$0xff]  ;;  %v94_v44 = vld [vmem:[#allocation6 + $0xf8] sm:$0xff]  ;;  %v77_v47 = vld [vmem:[#allocation6 + $0x70] sm:$0xff] }
  0x32   :  { %v297_v40 = vpack.c.bf16 %v92_v38, %v91_v37  ;;  %v76_v42 = vld [vmem:[#allocation6 + $0x68] sm:$0xff]  ;;  %v301_v46 = vpack.c.bf16 %v94_v44, %v93_v43  ;;  %v78_v48 = vld [vmem:[#allocation6 + $0x78] sm:$0xff]  ;;  %v55_v50 = vld [vmem:[#allocation3] sm:$0xff] }
  0x33   :  { %284 = vmatpush3.bf16.msra.mxu0 %v283_v19  ;;  %315 = vmatpush3.bf16.msra.mxu1 %v283_v19  ;;  %v299_v45 = vpack.c.bf16 %v76_v42, %v75_v41  ;;  %v303_v49 = vpack.c.bf16 %v78_v48, %v77_v47  ;;  %v59_v51 = vld [vmem:[#allocation3 + $0x20] sm:$0xff]  ;;  %v58_v52 = vld [vmem:[#allocation3 + $0x18] sm:$0xff]  ;;  %v57_v54 = vld [vmem:[#allocation3 + $0x10] sm:$0xff] }
  0x34   :  { %286 = vmatprep.subr.bf16.mxu0 %v285_v20  ;;  %308 = vmatprep.subr.bf16.mxu1 %v285_v20  ;;  %v62_v53 = vld [vmem:[#allocation3 + $0x38] sm:$0xff]  ;;  %v61_v55 = vld [vmem:[#allocation3 + $0x30] sm:$0xff]  ;;  %v228_v59 = vld [vmem:[%s474_s2] ss:$0 sm:$0xff]  ;;  %s372_s2 = scalar_lea.vmem %s216_s14, 512 }
  0x35   :  { %p373_p2 = scmp.ne.s32.totalorder %s216_s14, %s372_s2  ;;  %p378_p4 = scmp.lt.s32.totalorder %s372_s2, %s372_s2 }
  0x37   :  { %288 = vmatpush3.bf16.msra.mxu0 %v287_v27  ;;  %316 = vmatpush3.bf16.msra.mxu1 %v287_v27  ;;  %p379_p5 = por %p378_p4, %p377_p3 }
  0x38   :  { %290 = vmatprep.subr.bf16.mxu0 %v289_v28  ;;  %309 = vmatprep.subr.bf16.mxu1 %v289_v28 }
  0x39   :  { %p380_p6 = pnand %p379_p5, %p373_p2 }
  0x3b   :  { %292 = vmatpush3.bf16.msra.mxu0 %v291_v33  ;;  %317 = vmatpush3.bf16.msra.mxu1 %v291_v33 }
  0x3c   :  { %294 = vmatprep.subr.bf16.mxu0 %v293_v34  ;;  %310 = vmatprep.subr.bf16.mxu1 %v293_v34 }
  0x3f   :  { %296 = vmatpush3.bf16.msra.mxu0 %v295_v39  ;;  %318 = vmatpush3.bf16.msra.mxu1 %v295_v39 }
  0x40   :  { %298 = vmatprep.subr.bf16.mxu0 %v297_v40  ;;  %311 = vmatprep.subr.bf16.mxu1 %v297_v40 }
  0x43   :  { %300 = vmatpush3.bf16.msra.mxu0 %v299_v45  ;;  %319 = vmatpush3.bf16.msra.mxu1 %v299_v45 }
  0x44   :  { %302 = vmatprep.subr.bf16.mxu0 %v301_v46  ;;  %312 = vmatprep.subr.bf16.mxu1 %v301_v46 }
  0x47   :  { %304 = vmatpush3.bf16.msra.mxu0 %v303_v49  ;;  %320 = vmatpush3.bf16.msra.mxu1 %v303_v49 }
  0x4a   :  { %160 = vmatmul.mubr.f32.vlgmr.msra.gmra.mrb[0].mxu0 %v55_v50  ;;  %170 = vmatmul.mubr.f32.vlgmr.msra.gmra.mrb[0].mxu1 %v59_v51 }
  0x4b   :  { %164 = vmatprep.mubr.f32.mxu0 %v58_v52  ;;  %174 = vmatprep.mubr.f32.mxu1 %v62_v53 }
  0x4e   :  { %165 = vmatmul.mubr.f32.gmra.mrb[2].mxu0 %v57_v54  ;;  %175 = vmatmul.mubr.f32.gmra.mrb[2].mxu1 %v61_v55 }
 0x11d   :  { %v261_v56 = vpop.f32.mrb[0].mxu0  ;;  %v267_v57 = vpop.f32.mrb[0].mxu1 }
 0x11e   :  { %v262_v58 = vpop.f32.mrb[1].mxu0  ;;  %v268_v60 = vpop.f32.mrb[1].mxu1 }
 0x11f   :  { %v263_v61 = vadd.f32 %v262_v58, %v261_v56  ;;  %v269_v62 = vadd.f32 %v268_v60, %v267_v57 }
 0x121   :  { %v202_v63 = vadd.f32 %v263_v61, %v228_v59  ;;  %v204_v0 = vadd.f32 %v269_v62, %v228_v59  ;;  %v264_v1 = vpop.f32.mrb[2].mxu0  ;;  %v270_v2 = vpop.f32.mrb[2].mxu1 }
 0x122   :  { %v265_v3 = vpop.f32.mrb[3].mxu0  ;;  %v271_v4 = vpop.f32.mrb[3].mxu1 }
 0x123   :  { %206 = vst [vmem:[#allocation8] sm:$0xff] %v202_v63  ;;  %208 = vst [vmem:[#allocation8 + $0x10] sm:$0xff] %v204_v0  ;;  %v266_v5 = vadd.f32 %v265_v3, %v264_v1  ;;  %v272_v6 = vadd.f32 %v271_v4, %v270_v2 }
 0x125   :  { %v203_v7 = vadd.f32 %v266_v5, %v228_v59  ;;  %v205_v8 = vadd.f32 %v272_v6, %v228_v59 }
 0x127   :  { %207 = vst [vmem:[#allocation8 + $0x8] sm:$0xff] %v203_v7  ;;  %209 = vst [vmem:[#allocation8 + $0x18] sm:$0xff] %v205_v8 }
 0x128   :  { %383 = shalt.err (!%p380_p6)
}
 0x129   :  { %s384_s17 = scalar_lea.hbm %s475_s3, 512 }
 0x12a   :  { %p385_p7 = scmp.ne.s32.totalorder %s475_s3, %s384_s17  ;;  %p388_p8 = scmp.lt.u32.totalorder %s384_s17, %s475_s3 }
 0x12c   :  { %p390_p9 = pnand %p388_p8, %p385_p7 }
 0x12e   :  { %393 = shalt.err (!%p390_p9)
}
 0x12f   :  { %221 = dma.vmem_to_hbm [thread:$0]  %s216_s14, 512, %s475_s3, [#allocation5], %s404_s0, %s404_s0, %s405_s9  }
 0x130   :  { %398 = dma.done.wait [#allocation5], 512  }
 0x131   :  { %399 = vsyncadd [#allocation5], 4294966784 }
 0x132   :  { %225 = vsyncpa [#allocation4], 1 }
 0x133   :  { %226 = vsyncpa [#allocation7], 1 }
 0x134   :  { %227 = vsyncpa [#allocation5], 1 }

</bundles_post_ra>
